<compile_context>
chip_gen: v7x
topology: tpu7x:2x2x1
jax: 0.10.0
libtpu: 0.0.40
codegen_flags: <defaults>
</compile_context>

<pallas_src>
import functools

import numpy as np
import jax
import jax.numpy as jnp
from jax.experimental import pallas as pl
from jax.experimental.pallas import tpu as pltpu

SR = 16000
FRAME_LENGTH = 64
N_FFT = FRAME_LENGTH * 5            # 320
ATTENUATE_GAIN = 2.0


# ---------------------------------------------------------------------------
# host-side constants (numpy, computed once per shape)
# ---------------------------------------------------------------------------
def hann_window(n):
    # torch.hann_window default (periodic): 0.5 * (1 - cos(2*pi*i/n))
    i = np.arange(n, dtype=np.float64)
    return 0.5 - 0.5 * np.cos(2.0 * np.pi * i / n)


def a_weighting(freqs, min_db=-45.0):
    f = np.maximum(np.asarray(freqs, dtype=np.float64), 1e-12)  # avoid log10(0)
    f2 = f ** 2
    c = np.array([12200.0, 20.6, 107.7, 737.9], dtype=np.float64) ** 2
    db = 2.0 + 20.0 * (np.log10(c[0]) + 4.0 * np.log10(f)
                       - np.log10(f2 + c[0]) - np.log10(f2 + c[1])
                       - 0.5 * np.log10(f2 + c[2]) - 0.5 * np.log10(f2 + c[3]))
    db = np.maximum(db, min_db)
    return 10.0 ** (db / 10.0)


def bin_frequencies():
    freq_bin_size = SR / N_FFT
    return np.array([(freq_bin_size * i) % (0.5 * SR) for i in range(N_FFT)],
                    dtype=np.float64)


def _vmem_capacity_bytes():
    try:
        return int(pltpu.get_tpu_info().vmem_capacity_bytes)
    except Exception:
        return 64 << 20                     # conservative (v7x per-TensorCore)


def _pick_chunks(batch, num_frames, vmem_cap):
    """(BB, C): batch elems per grid step, grid steps. Batch is padded to BB*C."""
    # Per-step bf16 framed-audio block (double buffered) gets ~1/8 of VMEM:
    # 16 MiB on 128 MiB v5e/v6e, 8 MiB on 64 MiB v7x (review: re-derive per chip).
    budget = max(1 << 20, vmem_cap // 8)
    max_bb = max(2, budget // (2 * num_frames * N_FFT * 2))
    # Cap BB: the block-diagonal A-weight matrix is (BB*N, 128*ceil(BB/128)),
    # so its VMEM / reduction-matmul cost grows superlinearly with BB.
    bb = min(max(batch, 2), max_bb, 32)
    bb -= bb % 2      # even BB -> BB*320 is a multiple of 128 (no masked lane tail)
    bb = max(bb, 2)
    c = -(-batch // bb)   # never degrade to BB=1; pad the batch instead
    # TODO(synk): on v7x (2 TensorCores) round c up to a multiple of 2 when c >= 2
    #   so both cores get equal work under dimension_semantics=("parallel",).
    return bb, c


def _const_block_spec(shape):
    """Full-array BlockSpec, constant index map, single-buffered when supported."""
    idx = lambda c: tuple(0 for _ in shape)
    if hasattr(pl, "Buffered"):
        try:
            return pl.BlockSpec(shape, idx, pipeline_mode=pl.Buffered(1))
        except TypeError:
            pass
    return pl.BlockSpec(shape, idx)


# ---------------------------------------------------------------------------
# Pallas kernel: stacked half-spectrum DFT matmul + weighted-reduction matmul
# ---------------------------------------------------------------------------
def loudness_kernel(x_ref, cs_ref, sw_ref, o_ref, *, mp):
    # x_ref:  (1, F, BB*N)  bf16  framed audio chunk (batch folded into lanes)
    # cs_ref: (2*Mp, F)     bf16  stacked [cos; -sin] frame-axis DFT (first M bins)
    # sw_ref: (BB*N, SW)    bf16  block-diagonal A-weights (hann^2 & gain folded)
    # o_ref:  (1, Mp, SW)   f32   loudness (first M rows / BB cols meaningful)
    x = x_ref[0]                                             # (F, BB*N)
    y = jnp.dot(cs_ref[...], x,
                preferred_element_type=jnp.float32)          # (2*Mp, BB*N)  MXU
    re = y[:mp]                                              # tile-aligned slices
    im = y[mp:]
    power = (re * re + im * im).astype(jnp.bfloat16)         # VPU f32 -> bf16
    s = jnp.dot(power, sw_ref[...],
                preferred_element_type=jnp.float32)          # (Mp, SW)      MXU
    o_ref[0] = jnp.sqrt(s)


# ---------------------------------------------------------------------------
# wrapper
# ---------------------------------------------------------------------------
@jax.jit
def loudness_extractor(audio):
    audio = audio.astype(jnp.float32)
    B, T = audio.shape
    hop = FRAME_LENGTH
    F = (T + 4 * hop - N_FFT) // hop + 1
    M = F // 2 + 1                        # unique bins (real input over frames)
    Mp = ((M + 7) // 8) * 8               # sublane-aligned bin count

    vmem_cap = _vmem_capacity_bytes()
    BB, C = _pick_chunks(B, F, vmem_cap)
    B_pad = BB * C
    SW = 128 * ((BB + 127) // 128)        # lane-dense (unmasked) output width
    Tp = T + 4 * hop

    # framing: pad batch+time, then ONE fused gather straight into the final
    # (C, F, BB*N) bf16 layout.
    padded = jnp.pad(audio, ((0, B_pad - B), (2 * hop, 2 * hop)))
    flat = padded.reshape(C, BB * Tp)
    gidx = (np.arange(BB)[None, :, None] * Tp
            + np.arange(F)[:, None, None] * hop
            + np.arange(N_FFT)[None, None, :]).reshape(F, BB * N_FFT)
    x3 = flat[:, gidx].astype(jnp.bfloat16)                  # (C, F, BB*N)

    # stacked [cos; -sin] DFT-over-frames matrix, first M bins only, each half
    # zero-padded to Mp rows so the re/im slices are (8,128)-tile aligned.
    k = np.arange(M, dtype=np.float64)[:, None]
    f_ = np.arange(F, dtype=np.float64)[None, :]
    ang = 2.0 * np.pi * k * f_ / F
    cs_np = np.zeros((2 * Mp, F), dtype=np.float32)
    cs_np[:M] = np.cos(ang)
    cs_np[Mp:Mp + M] = -np.sin(ang)
    cs = jnp.asarray(cs_np, dtype=jnp.bfloat16)              # (2*Mp, F)

    # A-weights with hann^2 and (gain/n_fft)^2 folded in, one diagonal block per
    # batch element, zero-padded to SW columns; bf16 for the single-pass MXU path.
    aw2 = (a_weighting(bin_frequencies())
           * hann_window(N_FFT) ** 2
           * (ATTENUATE_GAIN / N_FFT) ** 2)                  # (N,) float64
    sw_np = np.zeros((BB * N_FFT, SW), dtype=np.float32)
    for b in range(BB):
        sw_np[b * N_FFT:(b + 1) * N_FFT, b] = aw2
    sw = jnp.asarray(sw_np, dtype=jnp.bfloat16)

    # derived VMEM footprint (worst case: everything double-buffered)
    x_bytes = F * BB * N_FFT * 2
    const_bytes = cs.size * 2 + sw.size * 2
    out_bytes = Mp * SW * 4
    footprint = 2 * x_bytes + 2 * const_bytes + 2 * out_bytes
    cp_kwargs = dict(dimension_semantics=("parallel",))
    if footprint > (12 << 20):            # only override when past default scoped limit
        cp_kwargs["vmem_limit_bytes"] = int(min(2 * footprint, 56 << 20))

    kernel = functools.partial(loudness_kernel, mp=Mp)
    out = pl.pallas_call(
        kernel,
        out_shape=jax.ShapeDtypeStruct((C, Mp, SW), jnp.float32),
        grid_spec=pltpu.PrefetchScalarGridSpec(
            num_scalar_prefetch=0,
            grid=(C,),
            in_specs=[
                pl.BlockSpec((1, F, BB * N_FFT), lambda c: (c, 0, 0)),
                _const_block_spec((2 * Mp, F)),
                _const_block_spec((BB * N_FFT, SW)),
            ],
            out_specs=pl.BlockSpec((1, Mp, SW), lambda c: (c, 0, 0)),
        ),
        compiler_params=pltpu.CompilerParams(**cp_kwargs),
    )(x3, cs, sw)                                            # (C, Mp, SW)

    # (C, Mp, SW) -> (B, M) -> mirror to the full (B, F) via conjugate symmetry
    half = out[:, :M, :BB].transpose(0, 2, 1).reshape(B_pad, M)[:B]
    mirror = np.minimum(np.arange(F), F - np.arange(F))
    return half[:, mirror]


# ---------------------------------------------------------------------------
# pure-JAX reference (f32, jnp.fft) for a correctness check
# ---------------------------------------------------------------------------
def loudness_reference(audio):
    audio = audio.astype(jnp.float32)
    B, T = audio.shape
    padded = jnp.pad(audio, ((0, 0), (FRAME_LENGTH * 2, FRAME_LENGTH * 2)))
    F = (T + 4 * FRAME_LENGTH - N_FFT) // FRAME_LENGTH + 1
    idx = (np.arange(F)[:, None] * FRAME_LENGTH + np.arange(N_FFT)[None, :])
    sliced = padded[:, idx]                                  # (B, F, N)
    win = jnp.asarray(hann_window(N_FFT).astype(np.float32))
    xw = sliced * win[None, None, :]
    X = jnp.fft.fft(xw, axis=1)                              # FFT over frames
    power = jnp.real(X) ** 2 + jnp.imag(X) ** 2
    aw = jnp.asarray(a_weighting(bin_frequencies()).astype(np.float32))
    weighted = power * aw[None, None, :]
    return jnp.sqrt(jnp.sum(weighted, axis=2)) / N_FFT * ATTENUATE_GAIN


if __name__ == "__main__":
    key = jax.random.PRNGKey(0)
    B, T = 2, 512                      # -> num_frames F = 8
    audio = jax.random.normal(key, (B, T), dtype=jnp.float32)

    out = jax.block_until_ready(loudness_extractor(audio))
    ref = jax.block_until_ready(loudness_reference(audio))

    # bf16 MXU operands (audio/cs/power/sw) with f32 accumulation => ~0.5-1%
    # relative agreement vs the f32 FFT reference.
    np.testing.assert_allclose(np.asarray(out), np.asarray(ref),
                               rtol=2e-2, atol=2e-3)
    print("KERNEL_OK")
</pallas_src>

<mosaic_0001>
module attributes {stable_mosaic.version = 11 : i64} {
  func.func @loudness_kernel(%arg0: i32, %arg1: memref<1x8x640xbf16, #tpu.memory_space<vmem>>, %arg2: memref<16x8xbf16, #tpu.memory_space<vmem>>, %arg3: memref<640x128xbf16, #tpu.memory_space<vmem>>, %arg4: memref<1x8x128xf32, #tpu.memory_space<vmem>>) attributes {dimension_semantics = [#tpu.dimension_semantics<parallel>], iteration_bounds = array<i64: 1>, scalar_prefetch = 0 : i64, scratch_operands = 0 : i64, tpu.core_type = #tpu.core_type<tc>, window_params = [{transform_indices = @transform_0, window_bounds = array<i64: 1, 8, 640>}, {pipeline_mode = #tpu.pipeline_mode<synchronous>, transform_indices = @transform_1, window_bounds = array<i64: 16, 8>}, {pipeline_mode = #tpu.pipeline_mode<synchronous>, transform_indices = @transform_2, window_bounds = array<i64: 640, 128>}, {transform_indices = @transform_3, window_bounds = array<i64: 1, 8, 128>}]} {
    %c0 = arith.constant 0 : index
    %c0_0 = arith.constant 0 : index
    %c0_1 = arith.constant 0 : index
    %0 = vector.load %arg1[%c0, %c0_0, %c0_1] : memref<1x8x640xbf16, #tpu.memory_space<vmem>>, vector<1x8x640xbf16>
    %1 = vector.shape_cast %0 : vector<1x8x640xbf16> to vector<8x640xbf16>
    %c0_2 = arith.constant 0 : index
    %c0_3 = arith.constant 0 : index
    %2 = vector.load %arg2[%c0_2, %c0_3] : memref<16x8xbf16, #tpu.memory_space<vmem>>, vector<16x8xbf16>
    %cst = arith.constant dense<0.000000e+00> : vector<16x640xf32>
    %3 = tpu.matmul %2, %1, %cst {dimension_numbers = #tpu.dot_dimension_numbers<[1], [0], [0], [1], [0, 0, 1, 1], [], []>} : vector<16x8xbf16>, vector<8x640xbf16>, vector<16x640xf32> -> vector<16x640xf32>
    %4 = vector.extract_strided_slice %3 {offsets = [0, 0], sizes = [8, 640], strides = [1, 1]} : vector<16x640xf32> to vector<8x640xf32>
    %5 = vector.extract_strided_slice %3 {offsets = [8, 0], sizes = [8, 640], strides = [1, 1]} : vector<16x640xf32> to vector<8x640xf32>
    %6 = arith.mulf %4, %4 : vector<8x640xf32>
    %7 = arith.mulf %5, %5 : vector<8x640xf32>
    %8 = arith.addf %6, %7 : vector<8x640xf32>
    %9 = arith.truncf %8 : vector<8x640xf32> to vector<8x640xbf16>
    %c0_4 = arith.constant 0 : index
    %c0_5 = arith.constant 0 : index
    %10 = vector.load %arg3[%c0_4, %c0_5] : memref<640x128xbf16, #tpu.memory_space<vmem>>, vector<640x128xbf16>
    %cst_6 = arith.constant dense<0.000000e+00> : vector<8x128xf32>
    %11 = tpu.matmul %9, %10, %cst_6 {dimension_numbers = #tpu.dot_dimension_numbers<[1], [0], [0], [1], [0, 0, 1, 1], [], []>} : vector<8x640xbf16>, vector<640x128xbf16>, vector<8x128xf32> -> vector<8x128xf32>
    %12 = math.sqrt %11 : vector<8x128xf32>
    %c0_7 = arith.constant 0 : index
    %c0_8 = arith.constant 0 : index
    %c0_9 = arith.constant 0 : index
    %13 = vector.load %arg4[%c0_7, %c0_8, %c0_9] : memref<1x8x128xf32, #tpu.memory_space<vmem>>, vector<1x8x128xf32>
    %14 = vector.shape_cast %13 : vector<1x8x128xf32> to vector<8x128xf32>
    %15 = vector.shape_cast %12 : vector<8x128xf32> to vector<1x8x128xf32>
    tpu.vector_store %arg4[%c0_7, %c0_8, %c0_9], %15 {strides = array<i32>} : memref<1x8x128xf32, #tpu.memory_space<vmem>>, vector<1x8x128xf32>,
    return
  }
  func.func @transform_0(%arg0: i32) -> (i32, i32, i32) {
    %c0_i32 = arith.constant 0 : i32
    %c0_i32_0 = arith.constant 0 : i32
    %c0_i32_1 = arith.constant 0 : i32
    return %arg0, %c0_i32, %c0_i32_0 : i32, i32, i32
  }
  func.func @transform_1(%arg0: i32) -> (i32, i32) {
    %c0_i32 = arith.constant 0 : i32
    %c0_i32_0 = arith.constant 0 : i32
    %c0_i32_1 = arith.constant 0 : i32
    return %c0_i32, %c0_i32_0 : i32, i32
  }
  func.func @transform_2(%arg0: i32) -> (i32, i32) {
    %c0_i32 = arith.constant 0 : i32
    %c0_i32_0 = arith.constant 0 : i32
    %c0_i32_1 = arith.constant 0 : i32
    return %c0_i32, %c0_i32_0 : i32, i32
  }
  func.func @transform_3(%arg0: i32) -> (i32, i32, i32) {
    %c0_i32 = arith.constant 0 : i32
    %c0_i32_0 = arith.constant 0 : i32
    %c0_i32_1 = arith.constant 0 : i32
    return %arg0, %c0_i32, %c0_i32_0 : i32, i32, i32
  }
}

</mosaic_0001>

<bundles_post_ra>
// kernel: loudness_extractor.1
= control target key start
LH: loop header
LB: loop body
LE: loop exit
PB: predicated region body
PF: predicated region fallthrough
CT: control target
= control target key end

     0   :  { %vm42_vm0 = vcmask 1043456   ;;  %v840_v2 = vmov 0   ;;  %vm38_vm1 = vcmask 64512   ;;  %v841_v15 = vmov 0.0   ;;  %s1019_s0 = inlined_call_operand.vmem [shape: bf16[1,8,640], index: 0, kind: input, shape index: {}]   ;;  %s1020_s1 = inlined_call_operand.vmem [shape: bf16[16,8], index: 1, kind: input, shape index: {}]   ;;  %s1021_s2 = inlined_call_operand.vmem [shape: bf16[640,128], index: 2, kind: input, shape index: {}]   ;;  %s1022_s3 = inlined_call_operand.vmem [shape: f32[1,8,128], index: 3, kind: output, shape index: {}]  }
   0x1   :  { %v15_v0 = vld [vmem:[%s1019_s0] sm:$0xff]  ;;  %v16_v1 = vld [vmem:[%s1019_s0 + $0x8] sm:$0xff]  ;;  %90 = vmatprep.mubr.bf16.mxu0 %v840_v2  ;;  %v802_v14 = vld [vmem:[%s1021_s2 + $0x50] sm:$0xff]   ;;  %vm842_vm2 = vmmov 0  }
   0x2   :  { %v659_v3 = vcombine.high %v15_v0, %v15_v0  ;;  %v658_v4 = vcombine.low %v15_v0, %v15_v0  ;;  %v661_v5 = vcombine.high %v16_v1, %v16_v1  ;;  %v660_v6 = vcombine.low %v16_v1, %v16_v1  ;;  %v794_v7 = vld [vmem:[%s1020_s1] sm:$0xff]   ;;  %v800_v12 = vld [vmem:[%s1021_s2 + $0x48] sm:$0xff]   ;;  %v797_v16 = vld [vmem:[%s1019_s0 + $0x10] ss:$0 sps:$4 sm:$0xff]  }
   0x3   :  { %v798_v9 = vld [vmem:[%s1021_s2 + $0x40] sm:$0xff]   ;;  %v801_v13 = vld [vmem:[%s1021_s2 + $0x8] sm:$0xff]   ;;  %v803_v17 = vld [vmem:[%s1021_s2 + $0x10] sm:$0xff]   ;;  %v56_v19 = vsel %vm42_vm0, %v797_v16, 0 }
   0x4   :  { %663 = vmatprep.subr.msk.bf16.mxu0 %vm42_vm0, %v659_v3  ;;  %v44_v8 = vsel %vm42_vm0, %v658_v4, 0  ;;  %v799_v10 = vld [vmem:[%s1021_s2] sm:$0xff]   ;;  %v50_v11 = vsel %vm42_vm0, %v660_v6, 0  ;;  %710 = vmatprep.subr.bf16.mxu1 %v798_v9  ;;  %v806_v18 = vld [vmem:[%s1021_s2 + $0x58] sm:$0xff]   ;;  %v814_v25 = vld [vmem:[%s1021_s2 + $0x68] sm:$0xff]  }
   0x5   :  { %59 = vmatpush1.bf16.msra.mxu0 %v44_v8  ;;  %711 = vmatpush3.bf16.msra.mxu1 %v799_v10  ;;  %v804_v20 = vld [vmem:[%s1021_s2 + $0xc0] sm:$0xff]   ;;  %v807_v21 = vld [vmem:[%s1021_s2 + $0x18] sm:$0xff]   ;;  %v808_v26 = vld [vmem:[%s1021_s2 + $0xc8] sm:$0xff]  }
   0x6   :  { %665 = vmatprep.subr.msk.bf16.mxu0 %vm42_vm0, %v661_v5  ;;  %712 = vmatprep.subr.bf16.mxu1 %v800_v12  ;;  %v810_v22 = vld [vmem:[%s1021_s2 + $0x60] sm:$0xff]   ;;  %v815_v27 = vld [vmem:[%s1021_s2 + $0x28] sm:$0xff]   ;;  %v812_v29 = vld [vmem:[%s1021_s2 + $0xd0] sm:$0xff]  }
   0x7   :  { %v805_v23 = vld [vmem:[%s1021_s2 + $0x80] sm:$0xff]   ;;  %v809_v28 = vld [vmem:[%s1021_s2 + $0x88] sm:$0xff]   ;;  %v813_v30 = vld [vmem:[%s1021_s2 + $0x90] sm:$0xff]  }
   0x8   :  { %664 = vmatmul.mubr.msk.bf16.vlgmr.msra.gmra.mrb[0].mxu0 %vm38_vm1, %v794_v7  ;;  %v811_v24 = vld [vmem:[%s1021_s2 + $0x20] sm:$0xff]   ;;  %v816_v31 = vld [vmem:[%s1021_s2 + $0xd8] sm:$0xff]   ;;  %v818_v33 = vld [vmem:[%s1021_s2 + $0x70] sm:$0xff]  }
   0x9   :  { %102 = vmatpush1.bf16.msra.mxu0 %v50_v11  ;;  %133 = vmatprep.mubr.bf16.mxu0 %v840_v2  ;;  %v817_v32 = vld [vmem:[%s1021_s2 + $0x98] sm:$0xff]   ;;  %v819_v34 = vld [vmem:[%s1021_s2 + $0x30] sm:$0xff]   ;;  %v820_v35 = vld [vmem:[%s1021_s2 + $0xe0] sm:$0xff]  }
   0xa   :  { %763 = vmatprep.subr.bf16.mxu0 %v841_v15  ;;  %713 = vmatpush3.bf16.msra.mxu1 %v801_v13  ;;  %v821_v36 = vld [vmem:[%s1021_s2 + $0xa0] sm:$0xff]   ;;  %v822_v37 = vld [vmem:[%s1021_s2 + $0x78] sm:$0xff]   ;;  %v824_v39 = vld [vmem:[%s1021_s2 + $0xe8] sm:$0xff]  }
   0xb   :  { %714 = vmatprep.subr.bf16.mxu1 %v802_v14  ;;  %v823_v38 = vld [vmem:[%s1021_s2 + $0x38] sm:$0xff]   ;;  %v825_v40 = vld [vmem:[%s1021_s2 + $0xa8] sm:$0xff]   ;;  %v826_v41 = vld [vmem:[%s1021_s2 + $0xf0] sm:$0xff]  }
   0xc   :  { %v828_v42 = vld [vmem:[%s1021_s2 + $0xb0] sm:$0xff]   ;;  %v829_v43 = vld [vmem:[%s1021_s2 + $0xf8] sm:$0xff]   ;;  %v827_v57 = vld [vmem:[%s1021_s2 + $0x100] sm:$0xff]  }
   0xd   :  { %v831_v44 = vld [vmem:[%s1021_s2 + $0xb8] sm:$0xff]   ;;  %v830_v2 = vld [vmem:[%s1021_s2 + $0x108] sm:$0xff]  }
   0xe   :  { %715 = vmatpush3.bf16.msra.mxu1 %v803_v17  ;;  %v833_v14 = vld [vmem:[%s1021_s2 + $0x118] sm:$0xff]   ;;  %v834_v17 = vld [vmem:[%s1021_s2 + $0x120] sm:$0xff]  }
   0xf   :  { %716 = vmatprep.subr.bf16.mxu1 %v806_v18  ;;  %v835_v18 = vld [vmem:[%s1021_s2 + $0x128] sm:$0xff]  }
  0x10   :  { %666 = vmatmul.mubr.msk.bf16.vlgmr.msra.gmra.mrb[4].mxu0 %vm38_vm1, %v794_v7 }
  0x11   :  { %764 = vmatpush3.bf16.msra.mxu0 %v56_v19  ;;  %765 = vmatprep.mubr.msk.bf16.mxu0 %vm842_vm2, %v841_v15  ;;  %v836_v19 = vld [vmem:[%s1021_s2 + $0x130] sm:$0xff]  }
  0x12   :  { %732 = vmatprep.subr.bf16.mxu0 %v804_v20  ;;  %717 = vmatpush3.bf16.msra.mxu1 %v807_v21  ;;  %v837_v20 = vld [vmem:[%s1021_s2 + $0x138] sm:$0xff]  }
  0x13   :  { %718 = vmatprep.subr.bf16.mxu1 %v810_v22 }
  0x16   :  { %719 = vmatpush3.bf16.msra.mxu1 %v811_v24 }
  0x17   :  { %720 = vmatprep.subr.bf16.mxu1 %v814_v25 }
  0x18   :  { %766 = vmatmul.mubr.msk.bf16.vlgmr.msra.gmra.mrb[8].mxu0 %vm38_vm1, %v794_v7  ;;  %v832_v7 = vld [vmem:[%s1021_s2 + $0x110] sm:$0xff]  }
  0x19   :  { %733 = vmatpush3.bf16.msra.mxu0 %v805_v23 }
  0x1a   :  { %734 = vmatprep.subr.bf16.mxu0 %v808_v26  ;;  %721 = vmatpush3.bf16.msra.mxu1 %v815_v27 }
  0x1b   :  { %722 = vmatprep.subr.bf16.mxu1 %v818_v33 }
  0x1d   :  { %735 = vmatpush3.bf16.msra.mxu0 %v809_v28 }
  0x1e   :  { %736 = vmatprep.subr.bf16.mxu0 %v812_v29  ;;  %723 = vmatpush3.bf16.msra.mxu1 %v819_v34 }
  0x1f   :  { %724 = vmatprep.subr.bf16.mxu1 %v822_v37 }
  0x21   :  { %737 = vmatpush3.bf16.msra.mxu0 %v813_v30 }
  0x22   :  { %738 = vmatprep.subr.bf16.mxu0 %v816_v31  ;;  %725 = vmatpush3.bf16.msra.mxu1 %v823_v38 }
  0x23   :  { %769 = vmatprep.subr.bf16.mxu1 %v841_v15 }
  0x25   :  { %739 = vmatpush3.bf16.msra.mxu0 %v817_v32 }
  0x26   :  { %740 = vmatprep.subr.bf16.mxu0 %v820_v35 }
  0x29   :  { %741 = vmatpush3.bf16.msra.mxu0 %v821_v36 }
  0x2a   :  { %742 = vmatprep.subr.bf16.mxu0 %v824_v39 }
  0x2d   :  { %743 = vmatpush3.bf16.msra.mxu0 %v825_v40 }
  0x2e   :  { %744 = vmatprep.subr.bf16.mxu0 %v826_v41 }
  0x31   :  { %745 = vmatpush3.bf16.msra.mxu0 %v828_v42 }
  0x32   :  { %746 = vmatprep.subr.bf16.mxu0 %v829_v43 }
  0x35   :  { %747 = vmatpush3.bf16.msra.mxu0 %v831_v44 }
  0xdb   :  { %v92_v45 = vpop.f32.mrb[0].mxu0 }
  0xdc   :  { %v94_v46 = vpop.f32.mrb[1].mxu0  ;;  %v185_v48 = vmul.f32 %v92_v45, %v92_v45 }
  0xdd   :  { %v96_v47 = vpop.f32.mrb[2].mxu0  ;;  %v186_v51 = vmul.f32 %v94_v46, %v94_v46 }
  0xde   :  { %v190_v49 = vmul.f32 %v96_v47, %v96_v47  ;;  %v98_v50 = vpop.f32.mrb[3].mxu0 }
  0xdf   :  { %v191_v52 = vmul.f32 %v98_v50, %v98_v50 }
  0xe0   :  { %v195_v53 = vadd.f32 %v190_v49, %v185_v48 }
  0xe1   :  { %v196_v54 = vadd.f32 %v191_v52, %v186_v51 }
  0xe2   :  { %v200_v58 = vpack.c.bf16 %v195_v53, %v195_v53 }
  0xe3   :  { %v135_v55 = vpop.f32.mrb[4].mxu0  ;;  %v201_v56 = vpack.c.bf16 %v196_v54, %v196_v54 }
  0xe4   :  { %v187_v59 = vmul.f32 %v135_v55, %v135_v55  ;;  %v137_v60 = vpop.f32.mrb[5].mxu0 }
  0xe5   :  { %v188_v61 = vmul.f32 %v137_v60, %v137_v60  ;;  %v139_v62 = vpop.f32.mrb[6].mxu0  ;;  %557 = vmatprep.mubr.bf16.mxu1 %v201_v56 }
  0xe6   :  { %v192_v63 = vmul.f32 %v139_v62, %v139_v62  ;;  %v141_v0 = vpop.f32.mrb[7].mxu0  ;;  %558 = vmatmul.mubr.bf16.vlgmr.msra.gmra.mrb[0].mxu1 %v200_v58 }
  0xe7   :  { %v193_v1 = vmul.f32 %v141_v0, %v141_v0  ;;  %770 = vmatpush3.bf16.msra.mxu1 %v827_v57  ;;  %785 = vmatprep.mubr.msk.bf16.mxu1 %vm842_vm2, %v841_v15 }
  0xe8   :  { %v197_v3 = vadd.f32 %v192_v63, %v187_v59  ;;  %771 = vmatprep.subr.bf16.mxu1 %v841_v15 }
  0xe9   :  { %v198_v4 = vadd.f32 %v193_v1, %v188_v61 }
  0xea   :  { %v202_v5 = vpack.c.bf16 %v197_v3, %v197_v3 }
  0xeb   :  { %v203_v6 = vpack.c.bf16 %v198_v4, %v198_v4  ;;  %772 = vmatpush3.bf16.msra.mxu1 %v830_v2  ;;  %v178_v8 = vpop.f32.mrb[8].mxu0 }
  0xec   :  { %773 = vmatprep.subr.bf16.mxu1 %v841_v15  ;;  %v189_v9 = vmul.f32 %v178_v8, %v178_v8  ;;  %v767_v10 = vpop.f32.mrb[9].mxu0 }
  0xed   :  { %597 = vmatprep.mubr.bf16.mxu0 %v203_v6  ;;  %v181_v11 = vpop.f32.mrb[10].mxu0 }
  0xee   :  { %598 = vmatmul.mubr.bf16.vlgmr.msra.gmra.mrb[12].mxu0 %v202_v5  ;;  %v194_v12 = vmul.f32 %v181_v11, %v181_v11  ;;  %v768_v13 = vpop.f32.mrb[11].mxu0 }
  0xef   :  { %774 = vmatpush3.bf16.msra.mxu1 %v832_v7 }
  0xf0   :  { %775 = vmatprep.subr.bf16.mxu1 %v841_v15  ;;  %v199_v16 = vadd.f32 %v194_v12, %v189_v9 }
  0xf2   :  { %v204_v21 = vpack.c.bf16 %v199_v16, %v199_v16 }
  0xf3   :  { %776 = vmatpush3.bf16.msra.mxu1 %v833_v14 }
  0xf4   :  { %777 = vmatprep.subr.bf16.mxu1 %v841_v15 }
  0xf7   :  { %778 = vmatpush3.bf16.msra.mxu1 %v834_v17 }
  0xf8   :  { %779 = vmatprep.subr.bf16.mxu1 %v841_v15 }
  0xfb   :  { %780 = vmatpush3.bf16.msra.mxu1 %v835_v18 }
  0xfc   :  { %781 = vmatprep.subr.bf16.mxu1 %v841_v15 }
  0xff   :  { %782 = vmatpush3.bf16.msra.mxu1 %v836_v19 }
 0x100   :  { %783 = vmatprep.subr.bf16.mxu1 %v841_v15 }
 0x103   :  { %784 = vmatpush3.bf16.msra.mxu1 %v837_v20 }
 0x106   :  { %786 = vmatmul.mubr.bf16.vlgmr.msra.gmra.mrb[4].mxu1 %v204_v21 }
 0x1b9   :  { %v726_v22 = vpop.f32.mrb[0].mxu1 }
 0x1ba   :  { %v727_v23 = vpop.f32.mrb[1].mxu1 }
 0x1bb   :  { %v728_v24 = vadd.f32 %v727_v23, %v726_v22  ;;  %v729_v25 = vpop.f32.mrb[2].mxu1 }
 0x1bc   :  { %v730_v26 = vpop.f32.mrb[3].mxu1 }
 0x1c1   :  { %v748_v27 = vpop.f32.mrb[12].mxu0 }
 0x1c2   :  { %v749_v28 = vpop.f32.mrb[13].mxu0 }
 0x1c3   :  { %v750_v29 = vadd.f32 %v749_v28, %v748_v27  ;;  %v751_v30 = vpop.f32.mrb[14].mxu0 }
 0x1c4   :  { %v752_v31 = vpop.f32.mrb[15].mxu0 }
 0x1c5   :  { %v600_v32 = vadd.f32 %v750_v29, %v728_v24 }
 0x1d9   :  { %v639_v33 = vpop.f32.mrb[4].mxu1 }
 0x1da   :  { %v640_v34 = vadd.f32 %v639_v33, %v600_v32  ;;  %v787_v35 = vpop.f32.mrb[5].mxu1 }
 0x1db   :  { %v642_v36 = vpop.f32.mrb[6].mxu1 }
 0x1dc   :  { %838 = vrsqrt.f32 %v640_v34  ;;  %v788_v15 = vpop.f32.mrb[7].mxu1  ;;  %vm647_vm3 = vcmp.eq.f32.partialorder %v640_v34, inf  ;;  %v650_v39 = vand.u32 2147483648, %v640_v34  ;;  %vm649_vm4 = vcmp.eq.f32.partialorder %v640_v34, 0.0 }
 0x1e6   :  { %v839_v37 = vpop.eup %838 }
 0x1e7   :  { %v646_v38 = vmul.f32 %v839_v37, %v640_v34 }
 0x1e9   :  { %v648_v40 = vsel %vm647_vm3, %v640_v34, %v646_v38 }
 0x1ea   :  { %v651_v41 = vsel %vm649_vm4, %v650_v39, %v648_v40 }
 0x1eb   :  { %652 = vst [vmem:[%s1022_s3] sm:$0xff] %v651_v41 }

</bundles_post_ra>
